<compile_context>
chip_gen: v7x
topology: tpu7x:2x2x1
jax: 0.10.0
libtpu: 0.0.40
codegen_flags: <defaults>
</compile_context>

<pallas_src>
import math

import jax
import jax.numpy as jnp
from jax import lax
from jax.experimental import pallas as pl
from jax.experimental.pallas import tpu as pltpu

FEATURE_NUM = 32      # feature_num (not defined in the source snippet)
N_ACTIONS = 6         # n_actions (head 1, not defined in the source snippet)
N_ACTIONS2 = 8        # head 2 (fixed by the module)
BATCH = 8

OUT_W = 128           # lane-dense combined output width
ENT_COL = 16          # column holding total entropy
LOGP_COL = 17         # column holding summed action log-prob
ACT1_COL = 18         # column holding action 1 (as float)
ACT2_COL = 19         # column holding action 2 (as float)

# weight-slab row ranges (all blocks are 256 lanes wide, bf16)
_W_ROWS = [
    (0, 32),       # L1:  32 -> 256
    (32, 288),     # L2: 256 -> 256
    (288, 544),    # L3: 256 -> 128 (cols 128: zero)
    (544, 800),    # fused branch layer 1: [w4 | w6] -> 192 (cols 192: zero)
    (800, 1056),   # fused branch layer 2: block-diag(w5, w7) -> 160
    (1056, 1312),  # fused heads: block-diag(wc1, wc2) -> 14
]


# --------------------------------- kernel -----------------------------------

def actor_kernel(x_ref, noise_ref, w_ref, b_ref, out_ref):
    def dense(h, layer, cols=256, relu=True):
        r0, r1 = _W_ROWS[layer]
        w = w_ref[r0:r1, 0:cols]                                   # bf16 slice
        y = jnp.dot(h.astype(jnp.bfloat16), w,
                    preferred_element_type=jnp.float32)
        y = y + b_ref[layer:layer + 1, 0:cols]                     # f32 bias
        return jnp.maximum(y, 0.0) if relu else y

    x = x_ref[...].astype(jnp.float32)                             # [B, 32]

    # shared_base (3 layers) + fused action branches (2 layers) + fused heads
    h = dense(x, 0)                    # [B,256]
    h = dense(h, 1)                    # [B,256]
    h = dense(h, 2)                    # [B,256]  (cols 128: == 0)
    h = dense(h, 3)                    # [B,256]  a1_l1 | a2_l1   (cols 192: == 0)
    h = dense(h, 4)                    # [B,256]  a1    | a2      (cols 160: == 0)
    logits = dense(h, 5, cols=OUT_W, relu=False)   # [B,128]: logits1 | logits2 | 0

    B, L = logits.shape
    li = lax.broadcasted_iota(jnp.int32, (B, L), 1)
    m1 = li < N_ACTIONS
    m2 = jnp.logical_and(li >= N_ACTIONS, li < N_ACTIONS + N_ACTIONS2)
    m12 = li < N_ACTIONS + N_ACTIONS2
    NEG = jnp.float32(-1e30)
    BIG = jnp.int32(2 ** 30)

    # fused masked softmax over both heads (all f32)
    max1 = jnp.max(jnp.where(m1, logits, NEG), axis=-1, keepdims=True)
    max2 = jnp.max(jnp.where(m2, logits, NEG), axis=-1, keepdims=True)
    shifted = logits - jnp.where(m1, max1, max2)
    e = jnp.where(m12, jnp.exp(shifted), 0.0)
    s1 = jnp.sum(jnp.where(m1, e, 0.0), axis=-1, keepdims=True)
    s2 = jnp.sum(jnp.where(m2, e, 0.0), axis=-1, keepdims=True)
    den = jnp.where(m1, s1, s2)
    probs = jnp.where(m12, e / den, 0.0)                 # probs1 | probs2 | 0
    logp = shifted - jnp.where(m1, jnp.log(s1), jnp.log(s2))
    entropy = -jnp.sum(jnp.where(m12, probs * logp, 0.0),
                       axis=-1, keepdims=True)           # e1 + e2   [B,1]

    # action selection: argmax(logits + noise).  noise == 0  -> mode()
    #                                            noise == Gumbel -> sample()
    score = logits + noise_ref[...]
    sc1 = jnp.where(m1, score, NEG)
    sc2 = jnp.where(m2, score, NEG)
    a1 = jnp.min(jnp.where(sc1 == jnp.max(sc1, axis=-1, keepdims=True), li, BIG),
                 axis=-1, keepdims=True)                 # [B,1] in [0, 6)
    a2g = jnp.min(jnp.where(sc2 == jnp.max(sc2, axis=-1, keepdims=True), li, BIG),
                  axis=-1, keepdims=True)                # [B,1] in [6, 14)
    a2 = a2g - N_ACTIONS

    lp1 = jnp.sum(jnp.where(li == a1, logp, 0.0), axis=-1, keepdims=True)
    lp2 = jnp.sum(jnp.where(li == a2g, logp, 0.0), axis=-1, keepdims=True)
    lp_total = lp1 + lp2                                 # [B,1]

    # single lane-dense combined output store
    out = probs
    out = jnp.where(li == ENT_COL, entropy, out)
    out = jnp.where(li == LOGP_COL, lp_total, out)
    out = jnp.where(li == ACT1_COL, a1.astype(jnp.float32), out)
    out = jnp.where(li == ACT2_COL, a2.astype(jnp.float32), out)
    out_ref[...] = out


# --------------------------------- wrapper ----------------------------------

def actor_forward(w_slab, b_slab, x, noise):
    """noise: [B, 128] f32 — zeros for deterministic (mode), Gumbel for sampling."""
    B = x.shape[0]
    combined = pl.pallas_call(
        actor_kernel,
        out_shape=jax.ShapeDtypeStruct((B, OUT_W), jnp.float32),
        in_specs=[pl.BlockSpec(memory_space=pltpu.MemorySpace.VMEM)] * 4,
        out_specs=pl.BlockSpec(memory_space=pltpu.MemorySpace.VMEM),
    )(x, noise, w_slab, b_slab)

    actions = combined[:, ACT1_COL:ACT2_COL + 1].astype(jnp.int32)   # [B,2]
    action_log_probs = combined[:, LOGP_COL:LOGP_COL + 1]            # [B,1]
    probs1 = combined[:, 0:N_ACTIONS]                                # [B,6]
    probs2 = combined[:, N_ACTIONS:N_ACTIONS + N_ACTIONS2]           # [B,8]
    total_entropy = combined[:, ENT_COL:ENT_COL + 1]                 # [B,1]
    return actions, action_log_probs, [probs1, probs2], total_entropy


# ----------------------------- parameter packing -----------------------------

def init_packed_params(key):
    """Init per-layer params (mirroring nn.Linear shapes, stored [in, out]) and
    pack them into one bf16 weight slab + one f32 bias slab."""
    dims = [(FEATURE_NUM, 256), (256, 256), (256, 128),   # shared_base
            (128, 128), (128, 128),                        # action1_layers
            (128, 64), (64, 32)]                           # action2_layers
    keys = jax.random.split(key, 9)
    ws, bs = [], []
    for k, (fi, fo) in zip(keys[:7], dims):
        kw, kb = jax.random.split(k)
        bound = 1.0 / math.sqrt(fi)
        ws.append(jax.random.uniform(kw, (fi, fo), jnp.float32, -bound, bound))
        bs.append(jax.random.uniform(kb, (fo,), jnp.float32, -bound, bound))
    for k, (fi, fo) in zip(keys[7:], [(128, N_ACTIONS), (32, N_ACTIONS2)]):
        ws.append(0.01 * jax.random.normal(k, (fi, fo), jnp.float32))   # gain 0.01
        bs.append(jnp.zeros((fo,), jnp.float32))

    w1, w2, w3, w4, w5, w6, w7, wc1, wc2 = ws
    b1, b2, b3, b4, b5, b6, b7, bc1, bc2 = bs

    def place_w(blocks, rows=256, cols=256):
        m = jnp.zeros((rows, cols), jnp.float32)
        for r0, c0, blk in blocks:
            m = m.at[r0:r0 + blk.shape[0], c0:c0 + blk.shape[1]].set(blk)
        return m

    W1 = place_w([(0, 0, w1)], rows=FEATURE_NUM)           # [32,256]
    W2 = place_w([(0, 0, w2)])                             # [256,256]
    W3 = place_w([(0, 0, w3)])                             # 256 -> 128, padded
    Wb1 = place_w([(0, 0, w4), (0, 128, w6)])              # fused branch layer 1
    Wb2 = place_w([(0, 0, w5), (128, 128, w7)])            # fused branch layer 2
    Wh = place_w([(0, 0, wc1), (128, N_ACTIONS, wc2)])     # fused heads
    w_slab = jnp.concatenate([W1, W2, W3, Wb1, Wb2, Wh],
                             axis=0).astype(jnp.bfloat16)  # [1312, 256] bf16

    def place_b(blocks):
        v = jnp.zeros((256,), jnp.float32)
        for c0, blk in blocks:
            v = v.at[c0:c0 + blk.shape[0]].set(blk)
        return v

    b_rows = [
        place_b([(0, b1)]),
        place_b([(0, b2)]),
        place_b([(0, b3)]),
        place_b([(0, b4), (128, b6)]),
        place_b([(0, b5), (128, b7)]),
        place_b([(0, bc1), (N_ACTIONS, bc2)]),
        jnp.zeros((256,), jnp.float32),
        jnp.zeros((256,), jnp.float32),
    ]
    b_slab = jnp.stack(b_rows, axis=0)                     # [8, 256] f32
    return w_slab, b_slab


# ----------------------------------- main ------------------------------------

if __name__ == "__main__":
    key = jax.random.PRNGKey(0)
    pkey, xkey, gkey = jax.random.split(key, 3)
    w_slab, b_slab = init_packed_params(pkey)
    x = jax.random.normal(xkey, (BATCH, FEATURE_NUM), dtype=jnp.float32)

    # deterministic=True  -> mode (argmax): zero noise
    zero_noise = jnp.zeros((BATCH, OUT_W), jnp.float32)
    outs_det = actor_forward(w_slab, b_slab, x, zero_noise)
    jax.block_until_ready(outs_det)

    # deterministic=False -> Gumbel-max sampling (== multinomial in distribution)
    gumbel_noise = jax.random.gumbel(gkey, (BATCH, OUT_W), dtype=jnp.float32)
    outs_samp = actor_forward(w_slab, b_slab, x, gumbel_noise)
    jax.block_until_ready(outs_samp)

    print("KERNEL_OK")
</pallas_src>

<mosaic_0001>
module attributes {stable_mosaic.version = 11 : i64} {
  func.func @actor_kernel(%arg0: memref<8x32xf32, #tpu.memory_space<vmem>>, %arg1: memref<8x128xf32, #tpu.memory_space<vmem>>, %arg2: memref<1312x256xbf16, #tpu.memory_space<vmem>>, %arg3: memref<8x256xf32, #tpu.memory_space<vmem>>, %arg4: memref<8x128xf32, #tpu.memory_space<vmem>>) attributes {dimension_semantics = [], scalar_prefetch = 0 : i64, scratch_operands = 0 : i64, tpu.core_type = #tpu.core_type<tc>} {
    %c0 = arith.constant 0 : index
    %c0_0 = arith.constant 0 : index
    %0 = vector.load %arg0[%c0, %c0_0] : memref<8x32xf32, #tpu.memory_space<vmem>>, vector<8x32xf32>
    %c0_1 = arith.constant 0 : index
    %c0_2 = arith.constant 0 : index
    %1 = vector.load %arg2[%c0_1, %c0_2] : memref<1312x256xbf16, #tpu.memory_space<vmem>>, vector<32x256xbf16>
    %2 = arith.truncf %0 : vector<8x32xf32> to vector<8x32xbf16>
    %cst = arith.constant dense<0.000000e+00> : vector<8x256xf32>
    %3 = tpu.matmul %2, %1, %cst {dimension_numbers = #tpu.dot_dimension_numbers<[1], [0], [0], [1], [0, 0, 1, 1], [], []>} : vector<8x32xbf16>, vector<32x256xbf16>, vector<8x256xf32> -> vector<8x256xf32>
    %c0_3 = arith.constant 0 : index
    %c0_4 = arith.constant 0 : index
    %4 = vector.load %arg3[%c0_3, %c0_4] : memref<8x256xf32, #tpu.memory_space<vmem>>, vector<1x256xf32>
    %5 = vector.broadcast %4 : vector<1x256xf32> to vector<8x256xf32>
    %6 = arith.addf %3, %5 : vector<8x256xf32>
    %cst_5 = arith.constant 0.000000e+00 : f32
    %7 = vector.broadcast %cst_5 : f32 to vector<8x256xf32>
    %8 = arith.maximumf %6, %7 : vector<8x256xf32>
    %c32 = arith.constant 32 : index
    %c0_6 = arith.constant 0 : index
    %9 = vector.load %arg2[%c32, %c0_6] : memref<1312x256xbf16, #tpu.memory_space<vmem>>, vector<256x256xbf16>
    %10 = arith.truncf %8 : vector<8x256xf32> to vector<8x256xbf16>
    %cst_7 = arith.constant dense<0.000000e+00> : vector<8x256xf32>
    %11 = tpu.matmul %10, %9, %cst_7 {dimension_numbers = #tpu.dot_dimension_numbers<[1], [0], [0], [1], [0, 0, 1, 1], [], []>} : vector<8x256xbf16>, vector<256x256xbf16>, vector<8x256xf32> -> vector<8x256xf32>
    %c1 = arith.constant 1 : index
    %c0_8 = arith.constant 0 : index
    %12 = vector.load %arg3[%c1, %c0_8] : memref<8x256xf32, #tpu.memory_space<vmem>>, vector<1x256xf32>
    %13 = vector.broadcast %12 : vector<1x256xf32> to vector<8x256xf32>
    %14 = arith.addf %11, %13 : vector<8x256xf32>
    %cst_9 = arith.constant 0.000000e+00 : f32
    %15 = vector.broadcast %cst_9 : f32 to vector<8x256xf32>
    %16 = arith.maximumf %14, %15 : vector<8x256xf32>
    %c288 = arith.constant 288 : index
    %c0_10 = arith.constant 0 : index
    %17 = vector.load %arg2[%c288, %c0_10] : memref<1312x256xbf16, #tpu.memory_space<vmem>>, vector<256x256xbf16>
    %18 = arith.truncf %16 : vector<8x256xf32> to vector<8x256xbf16>
    %cst_11 = arith.constant dense<0.000000e+00> : vector<8x256xf32>
    %19 = tpu.matmul %18, %17, %cst_11 {dimension_numbers = #tpu.dot_dimension_numbers<[1], [0], [0], [1], [0, 0, 1, 1], [], []>} : vector<8x256xbf16>, vector<256x256xbf16>, vector<8x256xf32> -> vector<8x256xf32>
    %c2 = arith.constant 2 : index
    %c0_12 = arith.constant 0 : index
    %20 = vector.load %arg3[%c2, %c0_12] : memref<8x256xf32, #tpu.memory_space<vmem>>, vector<1x256xf32>
    %21 = vector.broadcast %20 : vector<1x256xf32> to vector<8x256xf32>
    %22 = arith.addf %19, %21 : vector<8x256xf32>
    %cst_13 = arith.constant 0.000000e+00 : f32
    %23 = vector.broadcast %cst_13 : f32 to vector<8x256xf32>
    %24 = arith.maximumf %22, %23 : vector<8x256xf32>
    %c544 = arith.constant 544 : index
    %c0_14 = arith.constant 0 : index
    %25 = vector.load %arg2[%c544, %c0_14] : memref<1312x256xbf16, #tpu.memory_space<vmem>>, vector<256x256xbf16>
    %26 = arith.truncf %24 : vector<8x256xf32> to vector<8x256xbf16>
    %cst_15 = arith.constant dense<0.000000e+00> : vector<8x256xf32>
    %27 = tpu.matmul %26, %25, %cst_15 {dimension_numbers = #tpu.dot_dimension_numbers<[1], [0], [0], [1], [0, 0, 1, 1], [], []>} : vector<8x256xbf16>, vector<256x256xbf16>, vector<8x256xf32> -> vector<8x256xf32>
    %c3 = arith.constant 3 : index
    %c0_16 = arith.constant 0 : index
    %28 = vector.load %arg3[%c3, %c0_16] : memref<8x256xf32, #tpu.memory_space<vmem>>, vector<1x256xf32>
    %29 = vector.broadcast %28 : vector<1x256xf32> to vector<8x256xf32>
    %30 = arith.addf %27, %29 : vector<8x256xf32>
    %cst_17 = arith.constant 0.000000e+00 : f32
    %31 = vector.broadcast %cst_17 : f32 to vector<8x256xf32>
    %32 = arith.maximumf %30, %31 : vector<8x256xf32>
    %c800 = arith.constant 800 : index
    %c0_18 = arith.constant 0 : index
    %33 = vector.load %arg2[%c800, %c0_18] : memref<1312x256xbf16, #tpu.memory_space<vmem>>, vector<256x256xbf16>
    %34 = arith.truncf %32 : vector<8x256xf32> to vector<8x256xbf16>
    %cst_19 = arith.constant dense<0.000000e+00> : vector<8x256xf32>
    %35 = tpu.matmul %34, %33, %cst_19 {dimension_numbers = #tpu.dot_dimension_numbers<[1], [0], [0], [1], [0, 0, 1, 1], [], []>} : vector<8x256xbf16>, vector<256x256xbf16>, vector<8x256xf32> -> vector<8x256xf32>
    %c4 = arith.constant 4 : index
    %c0_20 = arith.constant 0 : index
    %36 = vector.load %arg3[%c4, %c0_20] : memref<8x256xf32, #tpu.memory_space<vmem>>, vector<1x256xf32>
    %37 = vector.broadcast %36 : vector<1x256xf32> to vector<8x256xf32>
    %38 = arith.addf %35, %37 : vector<8x256xf32>
    %cst_21 = arith.constant 0.000000e+00 : f32
    %39 = vector.broadcast %cst_21 : f32 to vector<8x256xf32>
    %40 = arith.maximumf %38, %39 : vector<8x256xf32>
    %c1056 = arith.constant 1056 : index
    %c0_22 = arith.constant 0 : index
    %41 = vector.load %arg2[%c1056, %c0_22] : memref<1312x256xbf16, #tpu.memory_space<vmem>>, vector<256x128xbf16>
    %42 = arith.truncf %40 : vector<8x256xf32> to vector<8x256xbf16>
    %cst_23 = arith.constant dense<0.000000e+00> : vector<8x128xf32>
    %43 = tpu.matmul %42, %41, %cst_23 {dimension_numbers = #tpu.dot_dimension_numbers<[1], [0], [0], [1], [0, 0, 1, 1], [], []>} : vector<8x256xbf16>, vector<256x128xbf16>, vector<8x128xf32> -> vector<8x128xf32>
    %c5 = arith.constant 5 : index
    %c0_24 = arith.constant 0 : index
    %44 = vector.load %arg3[%c5, %c0_24] : memref<8x256xf32, #tpu.memory_space<vmem>>, vector<1x128xf32>
    %45 = vector.broadcast %44 : vector<1x128xf32> to vector<8x128xf32>
    %46 = arith.addf %43, %45 : vector<8x128xf32>
    %47 = tpu.iota {dimensions = array<i32: 1>} : vector<8x128xi32>
    %c6_i32 = arith.constant 6 : i32
    %48 = vector.broadcast %c6_i32 : i32 to vector<8x128xi32>
    %49 = arith.cmpi slt, %47, %48 : vector<8x128xi32>
    %c6_i32_25 = arith.constant 6 : i32
    %50 = vector.broadcast %c6_i32_25 : i32 to vector<8x128xi32>
    %51 = arith.cmpi sge, %47, %50 : vector<8x128xi32>
    %c14_i32 = arith.constant 14 : i32
    %52 = vector.broadcast %c14_i32 : i32 to vector<8x128xi32>
    %53 = arith.cmpi slt, %47, %52 : vector<8x128xi32>
    %54 = arith.andi %51, %53 : vector<8x128xi1>
    %c14_i32_26 = arith.constant 14 : i32
    %55 = vector.broadcast %c14_i32_26 : i32 to vector<8x128xi32>
    %56 = arith.cmpi slt, %47, %55 : vector<8x128xi32>
    %cst_27 = arith.constant -1.000000e+30 : f32
    %57 = vector.broadcast %cst_27 : f32 to vector<8x128xf32>
    %58 = arith.select %49, %46, %57 : vector<8x128xi1>, vector<8x128xf32>
    %cst_28 = arith.constant dense<0xFF800000> : vector<8xf32>
    %59 = vector.multi_reduction <maximumf>, %58, %cst_28 [1] : vector<8x128xf32> to vector<8xf32>
    %60 = vector.shape_cast %59 : vector<8xf32> to vector<8x1xf32>
    %cst_29 = arith.constant -1.000000e+30 : f32
    %61 = vector.broadcast %cst_29 : f32 to vector<8x128xf32>
    %62 = arith.select %54, %46, %61 : vector<8x128xi1>, vector<8x128xf32>
    %cst_30 = arith.constant dense<0xFF800000> : vector<8xf32>
    %63 = vector.multi_reduction <maximumf>, %62, %cst_30 [1] : vector<8x128xf32> to vector<8xf32>
    %64 = vector.shape_cast %63 : vector<8xf32> to vector<8x1xf32>
    %65 = vector.shape_cast %60 : vector<8x1xf32> to vector<8x1xf32>
    %66 = vector.broadcast %65 : vector<8x1xf32> to vector<8x128xf32>
    %67 = vector.shape_cast %64 : vector<8x1xf32> to vector<8x1xf32>
    %68 = vector.broadcast %67 : vector<8x1xf32> to vector<8x128xf32>
    %69 = arith.select %49, %66, %68 : vector<8x128xi1>, vector<8x128xf32>
    %70 = arith.subf %46, %69 : vector<8x128xf32>
    %71 = math.exp %70 : vector<8x128xf32>
    %cst_31 = arith.constant 0.000000e+00 : f32
    %72 = vector.broadcast %cst_31 : f32 to vector<8x128xf32>
    %73 = arith.select %56, %71, %72 : vector<8x128xi1>, vector<8x128xf32>
    %cst_32 = arith.constant 0.000000e+00 : f32
    %74 = vector.broadcast %cst_32 : f32 to vector<8x128xf32>
    %75 = arith.select %49, %73, %74 : vector<8x128xi1>, vector<8x128xf32>
    %cst_33 = arith.constant dense<0.000000e+00> : vector<8xf32>
    %76 = vector.multi_reduction <add>, %75, %cst_33 [1] : vector<8x128xf32> to vector<8xf32>
    %77 = vector.shape_cast %76 : vector<8xf32> to vector<8x1xf32>
    %cst_34 = arith.constant 0.000000e+00 : f32
    %78 = vector.broadcast %cst_34 : f32 to vector<8x128xf32>
    %79 = arith.select %54, %73, %78 : vector<8x128xi1>, vector<8x128xf32>
    %cst_35 = arith.constant dense<0.000000e+00> : vector<8xf32>
    %80 = vector.multi_reduction <add>, %79, %cst_35 [1] : vector<8x128xf32> to vector<8xf32>
    %81 = vector.shape_cast %80 : vector<8xf32> to vector<8x1xf32>
    %82 = vector.shape_cast %77 : vector<8x1xf32> to vector<8x1xf32>
    %83 = vector.broadcast %82 : vector<8x1xf32> to vector<8x128xf32>
    %84 = vector.shape_cast %81 : vector<8x1xf32> to vector<8x1xf32>
    %85 = vector.broadcast %84 : vector<8x1xf32> to vector<8x128xf32>
    %86 = arith.select %49, %83, %85 : vector<8x128xi1>, vector<8x128xf32>
    %87 = arith.divf %73, %86 : vector<8x128xf32>
    %cst_36 = arith.constant 0.000000e+00 : f32
    %88 = vector.broadcast %cst_36 : f32 to vector<8x128xf32>
    %89 = arith.select %56, %87, %88 : vector<8x128xi1>, vector<8x128xf32>
    %90 = math.log %77 : vector<8x1xf32>
    %91 = math.log %81 : vector<8x1xf32>
    %92 = vector.shape_cast %90 : vector<8x1xf32> to vector<8x1xf32>
    %93 = vector.broadcast %92 : vector<8x1xf32> to vector<8x128xf32>
    %94 = vector.shape_cast %91 : vector<8x1xf32> to vector<8x1xf32>
    %95 = vector.broadcast %94 : vector<8x1xf32> to vector<8x128xf32>
    %96 = arith.select %49, %93, %95 : vector<8x128xi1>, vector<8x128xf32>
    %97 = arith.subf %70, %96 : vector<8x128xf32>
    %98 = arith.mulf %89, %97 : vector<8x128xf32>
    %cst_37 = arith.constant 0.000000e+00 : f32
    %99 = vector.broadcast %cst_37 : f32 to vector<8x128xf32>
    %100 = arith.select %56, %98, %99 : vector<8x128xi1>, vector<8x128xf32>
    %cst_38 = arith.constant dense<0.000000e+00> : vector<8xf32>
    %101 = vector.multi_reduction <add>, %100, %cst_38 [1] : vector<8x128xf32> to vector<8xf32>
    %102 = vector.shape_cast %101 : vector<8xf32> to vector<8x1xf32>
    %cst_39 = arith.constant 0.000000e+00 : f32
    %103 = vector.broadcast %cst_39 : f32 to vector<8x1xf32>
    %104 = arith.subf %103, %102 : vector<8x1xf32>
    %c0_40 = arith.constant 0 : index
    %c0_41 = arith.constant 0 : index
    %105 = vector.load %arg1[%c0_40, %c0_41] : memref<8x128xf32, #tpu.memory_space<vmem>>, vector<8x128xf32>
    %106 = arith.addf %46, %105 : vector<8x128xf32>
    %cst_42 = arith.constant -1.000000e+30 : f32
    %107 = vector.broadcast %cst_42 : f32 to vector<8x128xf32>
    %108 = arith.select %49, %106, %107 : vector<8x128xi1>, vector<8x128xf32>
    %cst_43 = arith.constant -1.000000e+30 : f32
    %109 = vector.broadcast %cst_43 : f32 to vector<8x128xf32>
    %110 = arith.select %54, %106, %109 : vector<8x128xi1>, vector<8x128xf32>
    %cst_44 = arith.constant dense<0xFF800000> : vector<8xf32>
    %111 = vector.multi_reduction <maximumf>, %108, %cst_44 [1] : vector<8x128xf32> to vector<8xf32>
    %112 = vector.shape_cast %111 : vector<8xf32> to vector<8x1xf32>
    %113 = vector.broadcast %112 : vector<8x1xf32> to vector<8x128xf32>
    %114 = arith.cmpf oeq, %108, %113 : vector<8x128xf32>
    %c1073741824_i32 = arith.constant 1073741824 : i32
    %115 = vector.broadcast %c1073741824_i32 : i32 to vector<8x128xi32>
    %116 = arith.select %114, %47, %115 : vector<8x128xi1>, vector<8x128xi32>
    %cst_45 = arith.constant dense<2147483647> : vector<8xi32>
    %117 = vector.multi_reduction <minsi>, %116, %cst_45 [1] : vector<8x128xi32> to vector<8xi32>
    %118 = vector.shape_cast %117 : vector<8xi32> to vector<8x1xi32>
    %cst_46 = arith.constant dense<0xFF800000> : vector<8xf32>
    %119 = vector.multi_reduction <maximumf>, %110, %cst_46 [1] : vector<8x128xf32> to vector<8xf32>
    %120 = vector.shape_cast %119 : vector<8xf32> to vector<8x1xf32>
    %121 = vector.broadcast %120 : vector<8x1xf32> to vector<8x128xf32>
    %122 = arith.cmpf oeq, %110, %121 : vector<8x128xf32>
    %c1073741824_i32_47 = arith.constant 1073741824 : i32
    %123 = vector.broadcast %c1073741824_i32_47 : i32 to vector<8x128xi32>
    %124 = arith.select %122, %47, %123 : vector<8x128xi1>, vector<8x128xi32>
    %cst_48 = arith.constant dense<2147483647> : vector<8xi32>
    %125 = vector.multi_reduction <minsi>, %124, %cst_48 [1] : vector<8x128xi32> to vector<8xi32>
    %126 = vector.shape_cast %125 : vector<8xi32> to vector<8x1xi32>
    %c6_i32_49 = arith.constant 6 : i32
    %127 = vector.broadcast %c6_i32_49 : i32 to vector<8x1xi32>
    %128 = arith.subi %126, %127 : vector<8x1xi32>
    %129 = vector.broadcast %118 : vector<8x1xi32> to vector<8x128xi32>
    %130 = arith.cmpi eq, %47, %129 : vector<8x128xi32>
    %cst_50 = arith.constant 0.000000e+00 : f32
    %131 = vector.broadcast %cst_50 : f32 to vector<8x128xf32>
    %132 = arith.select %130, %97, %131 : vector<8x128xi1>, vector<8x128xf32>
    %cst_51 = arith.constant dense<0.000000e+00> : vector<8xf32>
    %133 = vector.multi_reduction <add>, %132, %cst_51 [1] : vector<8x128xf32> to vector<8xf32>
    %134 = vector.shape_cast %133 : vector<8xf32> to vector<8x1xf32>
    %135 = vector.broadcast %126 : vector<8x1xi32> to vector<8x128xi32>
    %136 = arith.cmpi eq, %47, %135 : vector<8x128xi32>
    %cst_52 = arith.constant 0.000000e+00 : f32
    %137 = vector.broadcast %cst_52 : f32 to vector<8x128xf32>
    %138 = arith.select %136, %97, %137 : vector<8x128xi1>, vector<8x128xf32>
    %cst_53 = arith.constant dense<0.000000e+00> : vector<8xf32>
    %139 = vector.multi_reduction <add>, %138, %cst_53 [1] : vector<8x128xf32> to vector<8xf32>
    %140 = vector.shape_cast %139 : vector<8xf32> to vector<8x1xf32>
    %141 = arith.addf %134, %140 : vector<8x1xf32>
    %c16_i32 = arith.constant 16 : i32
    %142 = vector.broadcast %c16_i32 : i32 to vector<8x128xi32>
    %143 = arith.cmpi eq, %47, %142 : vector<8x128xi32>
    %144 = vector.shape_cast %104 : vector<8x1xf32> to vector<8x1xf32>
    %145 = vector.broadcast %144 : vector<8x1xf32> to vector<8x128xf32>
    %146 = arith.select %143, %145, %89 : vector<8x128xi1>, vector<8x128xf32>
    %c17_i32 = arith.constant 17 : i32
    %147 = vector.broadcast %c17_i32 : i32 to vector<8x128xi32>
    %148 = arith.cmpi eq, %47, %147 : vector<8x128xi32>
    %149 = vector.shape_cast %141 : vector<8x1xf32> to vector<8x1xf32>
    %150 = vector.broadcast %149 : vector<8x1xf32> to vector<8x128xf32>
    %151 = arith.select %148, %150, %146 : vector<8x128xi1>, vector<8x128xf32>
    %c18_i32 = arith.constant 18 : i32
    %152 = vector.broadcast %c18_i32 : i32 to vector<8x128xi32>
    %153 = arith.cmpi eq, %47, %152 : vector<8x128xi32>
    %154 = arith.sitofp %118 : vector<8x1xi32> to vector<8x1xf32>
    %155 = vector.shape_cast %154 : vector<8x1xf32> to vector<8x1xf32>
    %156 = vector.broadcast %155 : vector<8x1xf32> to vector<8x128xf32>
    %157 = arith.select %153, %156, %151 : vector<8x128xi1>, vector<8x128xf32>
    %c19_i32 = arith.constant 19 : i32
    %158 = vector.broadcast %c19_i32 : i32 to vector<8x128xi32>
    %159 = arith.cmpi eq, %47, %158 : vector<8x128xi32>
    %160 = arith.sitofp %128 : vector<8x1xi32> to vector<8x1xf32>
    %161 = vector.shape_cast %160 : vector<8x1xf32> to vector<8x1xf32>
    %162 = vector.broadcast %161 : vector<8x1xf32> to vector<8x128xf32>
    %163 = arith.select %159, %162, %157 : vector<8x128xi1>, vector<8x128xf32>
    %c0_54 = arith.constant 0 : index
    %c0_55 = arith.constant 0 : index
    %164 = vector.load %arg4[%c0_54, %c0_55] : memref<8x128xf32, #tpu.memory_space<vmem>>, vector<8x128xf32>
    tpu.vector_store %arg4[%c0_54, %c0_55], %163 {strides = array<i32>} : memref<8x128xf32, #tpu.memory_space<vmem>>, vector<8x128xf32>,
    return
  }
}

</mosaic_0001>

<bundles_post_ra>
// kernel: tpu_custom_call.1
= control target key start
LH: loop header
LB: loop body
LE: loop exit
PB: predicated region body
PF: predicated region fallthrough
CT: control target
= control target key end

     0   :  { %9 = vsyncpa [#allocation3], 0  ;;  %s2112_s0 = inlined_call_operand.hbm [shape: f32[8,32], index: 0, kind: input, shape index: {}]   ;;  %s2113_s1 = inlined_call_operand.hbm [shape: f32[8,128], index: 1, kind: input, shape index: {}]   ;;  %s2114_s2 = inlined_call_operand.hbm [shape: bf16[1312,256], index: 2, kind: input, shape index: {}]   ;;  %s2115_s3 = inlined_call_operand.hbm [shape: f32[8,256], index: 3, kind: input, shape index: {}]   ;;  %s2116_s4 = inlined_call_operand.hbm [shape: f32[8,128], index: 4, kind: output, shape index: {}]  }
   0x1   :  { %10 = vsyncpa [#allocation6], 0 }
   0x2   :  { %11 = vsyncpa [#allocation9], 0 }
   0x3   :  { %12 = vsyncpa [#allocation4], 0  ;;  %s1960_s15 = smov [#allocation5]   ;;  %s1961_s17 = smov [#allocation2]  }
   0x4   :  { %s29_s16 = sshll.u32 %s1960_s15, 4  ;;  %s19_s18 = sshll.u32 %s1961_s17, 4  ;;  %s30_s16 = int_to_ptr.vmem [resolvable:$true] %s29_s16  ;;  %s20_s18 = int_to_ptr.vmem [resolvable:$true] %s19_s18 }
   0x5   :  { %s1842_s21 = scalar_lea.hbm %s2113_s1, 128 }
   0x6   :  { %p1843_p0 = scmp.ne.s32.totalorder %s2113_s1, %s1842_s21  ;;  %p1846_p1 = scmp.lt.u32.totalorder %s1842_s21, %s2113_s1 }
   0x8   :  { %p1848_p2 = pnand %p1846_p1, %p1843_p0 }
   0xa   :  { %1851 = shalt.err (!%p1848_p2)
}
   0xb   :  { %s1852_s26 = scalar_lea.vmem %s30_s16, 128  ;;  %p1857_p4 = scmp.lt.s32.totalorder %s30_s16, %s30_s16 }
   0xc   :  { %p1853_p3 = scmp.ne.s32.totalorder %s30_s16, %s1852_s26  ;;  %p1858_p5 = scmp.lt.s32.totalorder %s1852_s26, %s1852_s26 }
   0xe   :  { %p1859_p6 = por %p1858_p5, %p1857_p4 }
  0x10   :  { %p1860_p7 = pnand %p1859_p6, %p1853_p3 }
  0x12   :  { %1863 = shalt.err (!%p1860_p7)
}
  0x13   :  { %32 = dma.hbm_to_vmem [thread:$0]  %s2113_s1, 128, %s30_s16, [#allocation6]  }
  0x14   :  { %s1864_s5 = scalar_lea.hbm %s2112_s0, 128 }
  0x15   :  { %p1865_p8 = scmp.ne.s32.totalorder %s2112_s0, %s1864_s5  ;;  %p1868_p9 = scmp.lt.u32.totalorder %s1864_s5, %s2112_s0 }
  0x17   :  { %p1870_p10 = pnand %p1868_p9, %p1865_p8 }
  0x19   :  { %1873 = shalt.err (!%p1870_p10)
}
  0x1a   :  { %s1874_s10 = scalar_lea.vmem %s20_s18, 128  ;;  %p1879_p12 = scmp.lt.s32.totalorder %s20_s18, %s20_s18 }
  0x1b   :  { %p1875_p11 = scmp.ne.s32.totalorder %s20_s18, %s1874_s10  ;;  %p1880_p13 = scmp.lt.s32.totalorder %s1874_s10, %s1874_s10 }
  0x1d   :  { %p1881_p0 = por %p1880_p13, %p1879_p12 }
  0x1f   :  { %p1882_p1 = pnand %p1881_p0, %p1875_p11 }
  0x21   :  { %1885 = shalt.err (!%p1882_p1)
}
  0x22   :  { %22 = dma.hbm_to_vmem [thread:$0]  %s2112_s0, 128, %s20_s18, [#allocation3]  }
  0x23   :  { %s1962_s12 = smov [#allocation7]   ;;  %s1886_s16 = scalar_lea.hbm %s2114_s2, 20992 }
  0x24   :  { %s38_s13 = sshll.u32 %s1962_s12, 4  ;;  %p1887_p2 = scmp.ne.s32.totalorder %s2114_s2, %s1886_s16  ;;  %s39_s13 = int_to_ptr.vmem [resolvable:$true] %s38_s13 }
  0x25   :  { %p1890_p3 = scmp.lt.u32.totalorder %s1886_s16, %s2114_s2 }
  0x27   :  { %p1892_p4 = pnand %p1890_p3, %p1887_p2 }
  0x29   :  { %1895 = shalt.err (!%p1892_p4)
}
  0x2a   :  { %s1896_s22 = scalar_lea.vmem %s39_s13, 20992  ;;  %p1901_p6 = scmp.lt.s32.totalorder %s39_s13, %s39_s13 }
  0x2b   :  { %p1897_p5 = scmp.ne.s32.totalorder %s39_s13, %s1896_s22  ;;  %p1902_p7 = scmp.lt.s32.totalorder %s1896_s22, %s1896_s22 }
  0x2d   :  { %p1903_p8 = por %p1902_p7, %p1901_p6 }
  0x2f   :  { %p1904_p9 = pnand %p1903_p8, %p1897_p5 }
  0x31   :  { %1907 = shalt.err (!%p1904_p9)
}
  0x32   :  { %s1963_s0 = smov 128   ;;  %s1964_s18 = smov 8  }
  0x33   :  { %44 = dma.hbm_to_vmem [thread:$0]  %s2114_s2, 20992, %s39_s13, [#allocation6], %s1963_s0, %s1963_s0, %s1964_s18  }
  0x34   :  { %s1965_s25 = smov [#allocation8]   ;;  %s1908_s29 = scalar_lea.hbm %s2115_s3, 256 }
  0x35   :  { %s51_s26 = sshll.u32 %s1965_s25, 4  ;;  %p1909_p10 = scmp.ne.s32.totalorder %s2115_s3, %s1908_s29  ;;  %s52_s26 = int_to_ptr.vmem [resolvable:$true] %s51_s26 }
  0x36   :  { %p1912_p11 = scmp.lt.u32.totalorder %s1908_s29, %s2115_s3 }
  0x38   :  { %p1914_p12 = pnand %p1912_p11, %p1909_p10 }
  0x3a   :  { %1917 = shalt.err (!%p1914_p12)
}
  0x3b   :  { %s1918_s8 = scalar_lea.vmem %s52_s26, 256  ;;  %p1923_p0 = scmp.lt.s32.totalorder %s52_s26, %s52_s26 }
  0x3c   :  { %p1919_p13 = scmp.ne.s32.totalorder %s52_s26, %s1918_s8  ;;  %p1924_p1 = scmp.lt.s32.totalorder %s1918_s8, %s1918_s8 }
  0x3e   :  { %p1925_p2 = por %p1924_p1, %p1923_p0 }
  0x40   :  { %p1926_p3 = pnand %p1925_p2, %p1919_p13 }
  0x42   :  { %1929 = shalt.err (!%p1926_p3)
}
  0x43   :  { %54 = dma.hbm_to_vmem [thread:$0]  %s2115_s3, 256, %s52_s26, [#allocation9]  }
  0x44   :  { %1952 = dma.done.wait [#allocation3], 128  }
  0x45   :  { %1953 = vsyncadd [#allocation3], 4294967168 }
  0x46   :  { %1954 = dma.done.wait [#allocation6], 21120  }
  0x47   :  { %1955 = vsyncadd [#allocation6], 4294946176 }
  0x48   :  { %1956 = dma.done.wait [#allocation9], 256  }
  0x49   :  { %1957 = vsyncadd [#allocation9], 4294967040  ;;  %v1966_v0 = vmov 0   ;;  %v1620_v1 = vld [vmem:[#allocation7 + $0x4] ss:$8 sps:$4 sm:$0xff]   ;;  %v68_v5 = vld [vmem:[#allocation2] sm:$0xff] }
  0x4a   :  { %142 = vmatprep.mubr.bf16.mxu0 %v1966_v0  ;;  %v1622_v2 = vld [vmem:[#allocation7] ss:$8 sps:$4 sm:$0xff]   ;;  %110 = vmatprep.subr.bf16.mxu0 %v1620_v1  ;;  %v1623_v3 = vld [vmem:[#allocation7 + $0x14] ss:$8 sps:$4 sm:$0xff]   ;;  %v1625_v4 = vld [vmem:[#allocation7 + $0x10] ss:$8 sps:$4 sm:$0xff]   ;;  %v73_v9 = vpack.c.bf16 %v68_v5, %v68_v5 }
  0x4b   :  { %111 = vmatpush1.bf16.msra.mxu0 %v1622_v2  ;;  %v1626_v6 = vld [vmem:[#allocation7 + $0x24] ss:$8 sps:$4 sm:$0xff]   ;;  %v1628_v7 = vld [vmem:[#allocation7 + $0x20] ss:$8 sps:$4 sm:$0xff]   ;;  %v1629_v8 = vld [vmem:[#allocation7 + $0x34] ss:$8 sps:$4 sm:$0xff]  }
  0x4c   :  { %112 = vmatprep.subr.bf16.mxu0 %v1623_v3  ;;  %360 = vmatprep.subr.bf16.mxu1 %v1626_v6  ;;  %v1631_v10 = vld [vmem:[#allocation7 + $0x30] ss:$8 sps:$4 sm:$0xff]   ;;  %vm106_vm0 = vcmask 261120   ;;  %v1632_v11 = vld [vmem:[#allocation7 + $0x44] ss:$8 sps:$4 sm:$0xff]   ;;  %v76_v3 = vlaneseq  ;;  %s1967_s3 = smov [#allocation10]  }
  0x4d   :  { %361 = vmatpush1.bf16.msra.mxu1 %v1628_v7  ;;  %v1634_v12 = vld [vmem:[#allocation7 + $0x40] ss:$8 sps:$4 sm:$0xff]   ;;  %v1635_v13 = vld [vmem:[#allocation7 + $0x54] ss:$8 sps:$4 sm:$0xff]   ;;  %v1637_v14 = vld [vmem:[#allocation7 + $0x50] ss:$8 sps:$4 sm:$0xff]  }
  0x4e   :  { %362 = vmatprep.subr.bf16.mxu1 %v1629_v8  ;;  %v1638_v15 = vld [vmem:[#allocation7 + $0x64] ss:$8 sps:$4 sm:$0xff]   ;;  %v1640_v16 = vld [vmem:[#allocation7 + $0x60] ss:$8 sps:$4 sm:$0xff]   ;;  %v1641_v17 = vld [vmem:[#allocation7 + $0x74] ss:$8 sps:$4 sm:$0xff]  }
  0x4f   :  { %113 = vmatpush1.bf16.msra.mxu0 %v1625_v4  ;;  %v1643_v18 = vld [vmem:[#allocation7 + $0x70] ss:$8 sps:$4 sm:$0xff]   ;;  %v1644_v19 = vld [vmem:[#allocation7 + $0x84] ss:$8 sps:$4 sm:$0xff]   ;;  %v1646_v20 = vld [vmem:[#allocation7 + $0x80] ss:$8 sps:$4 sm:$0xff]  }
  0x50   :  { %v1647_v21 = vld [vmem:[#allocation7 + $0x94] ss:$8 sps:$4 sm:$0xff]   ;;  %v1649_v22 = vld [vmem:[#allocation7 + $0x90] ss:$8 sps:$4 sm:$0xff]   ;;  %v1650_v23 = vld [vmem:[#allocation7 + $0xa4] ss:$8 sps:$4 sm:$0xff]  }
  0x51   :  { %363 = vmatpush1.bf16.msra.mxu1 %v1631_v10  ;;  %v1652_v24 = vld [vmem:[#allocation7 + $0xa0] ss:$8 sps:$4 sm:$0xff]   ;;  %v1653_v25 = vld [vmem:[#allocation7 + $0xb4] ss:$8 sps:$4 sm:$0xff]   ;;  %v1655_v26 = vld [vmem:[#allocation7 + $0xb0] ss:$8 sps:$4 sm:$0xff]  }
  0x52   :  { %1444 = vmatmul.mubr.msk.bf16.vlgmr.msra.gmra.mrb[0].mxu0 %vm106_vm0, %v73_v9  ;;  %364 = vmatprep.subr.bf16.mxu1 %v1632_v11  ;;  %v1656_v27 = vld [vmem:[#allocation7 + $0xc4] ss:$8 sps:$4 sm:$0xff]   ;;  %v1658_v28 = vld [vmem:[#allocation7 + $0xc0] ss:$8 sps:$4 sm:$0xff]   ;;  %v1659_v29 = vld [vmem:[#allocation7 + $0xd4] ss:$8 sps:$4 sm:$0xff]  }
  0x53   :  { %v1661_v30 = vld [vmem:[#allocation7 + $0xd0] ss:$8 sps:$4 sm:$0xff]   ;;  %v1662_v31 = vld [vmem:[#allocation7 + $0xe4] ss:$8 sps:$4 sm:$0xff]   ;;  %v1664_v32 = vld [vmem:[#allocation7 + $0xe0] ss:$8 sps:$4 sm:$0xff]  }
  0x54   :  { %v1665_v33 = vld [vmem:[#allocation7 + $0xf4] ss:$8 sps:$4 sm:$0xff]   ;;  %v1667_v34 = vld [vmem:[#allocation7 + $0xf0] ss:$8 sps:$4 sm:$0xff]   ;;  %v1668_v35 = vld [vmem:[#allocation7 + $0x104] ss:$8 sps:$4 sm:$0xff]  }
  0x55   :  { %365 = vmatpush1.bf16.msra.mxu1 %v1634_v12  ;;  %v1670_v36 = vld [vmem:[#allocation7 + $0x100] ss:$8 sps:$4 sm:$0xff]   ;;  %v1671_v37 = vld [vmem:[#allocation7 + $0x114] ss:$8 sps:$4 sm:$0xff]   ;;  %v1673_v38 = vld [vmem:[#allocation7 + $0x110] ss:$8 sps:$4 sm:$0xff]  }
  0x56   :  { %366 = vmatprep.subr.bf16.mxu1 %v1635_v13  ;;  %v1674_v39 = vld [vmem:[#allocation7 + $0x120] ss:$8 sps:$4 sm:$0xff]   ;;  %v1676_v40 = vld [vmem:[#allocation7 + $0x124] ss:$8 sps:$4 sm:$0xff]   ;;  %v1679_v41 = vld [vmem:[#allocation7 + $0x134] ss:$8 sps:$4 sm:$0xff]  }
  0x57   :  { %610 = vmatprep.subr.bf16.mxu0 %v1676_v40  ;;  %v1677_v42 = vld [vmem:[#allocation7 + $0x130] ss:$8 sps:$4 sm:$0xff]   ;;  %v1682_v43 = vld [vmem:[#allocation7 + $0x144] ss:$8 sps:$4 sm:$0xff]   ;;  %v1680_v44 = vld [vmem:[#allocation7 + $0x140] ss:$8 sps:$4 sm:$0xff]  }
  0x58   :  { %611 = vmatpush1.bf16.msra.mxu0 %v1674_v39  ;;  %v1685_v45 = vld [vmem:[#allocation7 + $0x154] ss:$8 sps:$4 sm:$0xff]   ;;  %v1683_v46 = vld [vmem:[#allocation7 + $0x150] ss:$8 sps:$4 sm:$0xff]   ;;  %v1688_v47 = vld [vmem:[#allocation7 + $0x164] ss:$8 sps:$4 sm:$0xff]  }
  0x59   :  { %367 = vmatpush1.bf16.msra.mxu1 %v1637_v14  ;;  %612 = vmatprep.subr.bf16.mxu0 %v1679_v41  ;;  %v1686_v48 = vld [vmem:[#allocation7 + $0x160] ss:$8 sps:$4 sm:$0xff]   ;;  %v1691_v49 = vld [vmem:[#allocation7 + $0x174] ss:$8 sps:$4 sm:$0xff]   ;;  %v1689_v50 = vld [vmem:[#allocation7 + $0x170] ss:$8 sps:$4 sm:$0xff]  }
  0x5a   :  { %368 = vmatprep.subr.bf16.mxu1 %v1638_v15  ;;  %v1694_v51 = vld [vmem:[#allocation7 + $0x184] ss:$8 sps:$4 sm:$0xff]   ;;  %v1692_v52 = vld [vmem:[#allocation7 + $0x180] ss:$8 sps:$4 sm:$0xff]   ;;  %v1697_v53 = vld [vmem:[#allocation7 + $0x194] ss:$8 sps:$4 sm:$0xff]  }
  0x5b   :  { %v1695_v54 = vld [vmem:[#allocation7 + $0x190] ss:$8 sps:$4 sm:$0xff]   ;;  %v1700_v55 = vld [vmem:[#allocation7 + $0x1a4] ss:$8 sps:$4 sm:$0xff]   ;;  %v1698_v56 = vld [vmem:[#allocation7 + $0x1a0] ss:$8 sps:$4 sm:$0xff]  }
  0x5c   :  { %613 = vmatpush1.bf16.msra.mxu0 %v1677_v42  ;;  %v1703_v57 = vld [vmem:[#allocation7 + $0x1b4] ss:$8 sps:$4 sm:$0xff]   ;;  %v1701_v58 = vld [vmem:[#allocation7 + $0x1b0] ss:$8 sps:$4 sm:$0xff]   ;;  %v1706_v59 = vld [vmem:[#allocation7 + $0x1c4] ss:$8 sps:$4 sm:$0xff]  }
  0x5d   :  { %369 = vmatpush1.bf16.msra.mxu1 %v1640_v16  ;;  %614 = vmatprep.subr.bf16.mxu0 %v1682_v43  ;;  %v1704_v60 = vld [vmem:[#allocation7 + $0x1c0] ss:$8 sps:$4 sm:$0xff]   ;;  %v1709_v61 = vld [vmem:[#allocation7 + $0x1d4] ss:$8 sps:$4 sm:$0xff]   ;;  %v1707_v62 = vld [vmem:[#allocation7 + $0x1d0] ss:$8 sps:$4 sm:$0xff]  }
  0x5e   :  { %370 = vmatprep.subr.bf16.mxu1 %v1641_v17  ;;  %v1712_v63 = vld [vmem:[#allocation7 + $0x1e4] ss:$8 sps:$4 sm:$0xff]   ;;  %v1710_v0 = vld [vmem:[#allocation7 + $0x1e0] ss:$8 sps:$4 sm:$0xff]   ;;  %v1715_v1 = vld [vmem:[#allocation7 + $0x1f4] ss:$8 sps:$4 sm:$0xff]  }
  0x5f   :  { %v1713_v2 = vld [vmem:[#allocation7 + $0x1f0] ss:$8 sps:$4 sm:$0xff]   ;;  %v77_v4 = vshrl.u32 %v76_v3, 7  ;;  %v74_v6 = vld [vmem:[#allocation8] ss:$8 sm:$0x3] }
  0x60   :  { %615 = vmatpush1.bf16.msra.mxu0 %v1680_v44  ;;  %v1743_v39 = vld [vmem:[#allocation7 + $0x290] ss:$8 sps:$4 sm:$0xff]   ;;  %v1748_v40 = vld [vmem:[#allocation7 + $0x2a4] ss:$8 sps:$4 sm:$0xff]   ;;  %v1746_v41 = vld [vmem:[#allocation7 + $0x2a0] ss:$8 sps:$4 sm:$0xff]  }
  0x61   :  { %371 = vmatpush1.bf16.msra.mxu1 %v1643_v18  ;;  %616 = vmatprep.subr.bf16.mxu0 %v1685_v45  ;;  %v2042_v5 = vsub.s32 0, %v77_v4  ;;  %v2044_v7 = vsub.s32 1, %v77_v4  ;;  %v1751_v42 = vld [vmem:[#allocation7 + $0x2b4] ss:$8 sps:$4 sm:$0xff]   ;;  %v1749_v43 = vld [vmem:[#allocation7 + $0x2b0] ss:$8 sps:$4 sm:$0xff]  }
  0x62   :  { %372 = vmatprep.subr.bf16.mxu1 %v1644_v19  ;;  %v1754_v44 = vld [vmem:[#allocation7 + $0x2c4] ss:$8 sps:$4 sm:$0xff]   ;;  %v1752_v45 = vld [vmem:[#allocation7 + $0x2c0] ss:$8 sps:$4 sm:$0xff]   ;;  %v1769_v4 = vld [vmem:[#allocation7 + $0x314] ss:$8 sps:$4 sm:$0xff]  }
  0x63   :  { %v79_v8 = vrot.slane %v74_v6, %v2042_v5  ;;  %v83_v9 = vrot.slane %v74_v6, %v2044_v7  ;;  %v1767_v6 = vld [vmem:[#allocation7 + $0x310] ss:$8 sps:$4 sm:$0xff]   ;;  %s1429_s10 = sshll.u32 %s1967_s3, 4  ;;  %s1430_s10 = int_to_ptr.vmem [resolvable:$true] %s1429_s10 }
  0x64   :  { %617 = vmatpush1.bf16.msra.mxu0 %v1683_v46  ;;  %v1757_v46 = vld [vmem:[#allocation7 + $0x2d4] ss:$8 sps:$4 sm:$0xff]   ;;  %s1930_s1 = scalar_lea.vmem %s1430_s10, 128  ;;  %p1935_p5 = scmp.lt.s32.totalorder %s1430_s10, %s1430_s10 }
  0x65   :  { %373 = vmatpush1.bf16.msra.mxu1 %v1646_v20  ;;  %618 = vmatprep.subr.bf16.mxu0 %v1688_v47  ;;  %v1718_v20 = vld [vmem:[#allocation7 + $0x204] ss:$8 sps:$4 sm:$0xff]   ;;  %v1755_v47 = vld [vmem:[#allocation7 + $0x2d0] ss:$8 sps:$4 sm:$0xff]   ;;  %p1931_p4 = scmp.ne.s32.totalorder %s1430_s10, %s1930_s1  ;;  %p1936_p6 = scmp.lt.s32.totalorder %s1930_s1, %s1930_s1 }
  0x66   :  { %374 = vmatprep.subr.bf16.mxu1 %v1647_v21  ;;  %v1716_v21 = vld [vmem:[#allocation7 + $0x200] ss:$8 sps:$4 sm:$0xff]  }
  0x67   :  { %p1937_p7 = por %p1936_p6, %p1935_p5 }
  0x68   :  { %619 = vmatpush1.bf16.msra.mxu0 %v1686_v48  ;;  %v1760_v48 = vld [vmem:[#allocation7 + $0x2e4] ss:$8 sps:$4 sm:$0xff]  }
  0x69   :  { %375 = vmatpush1.bf16.msra.mxu1 %v1649_v22  ;;  %620 = vmatprep.subr.bf16.mxu0 %v1691_v49  ;;  %v1721_v22 = vld [vmem:[#allocation7 + $0x214] ss:$8 sps:$4 sm:$0xff]   ;;  %v1758_v49 = vld [vmem:[#allocation7 + $0x2e0] ss:$8 sps:$4 sm:$0xff]   ;;  %p1938_p8 = pnand %p1937_p7, %p1931_p4 }
  0x6a   :  { %376 = vmatprep.subr.bf16.mxu1 %v1650_v23  ;;  %v1719_v23 = vld [vmem:[#allocation7 + $0x210] ss:$8 sps:$4 sm:$0xff]  }
  0x6c   :  { %621 = vmatpush1.bf16.msra.mxu0 %v1689_v50  ;;  %v1763_v50 = vld [vmem:[#allocation7 + $0x2f4] ss:$8 sps:$4 sm:$0xff]  }
  0x6d   :  { %377 = vmatpush1.bf16.msra.mxu1 %v1652_v24  ;;  %622 = vmatprep.subr.bf16.mxu0 %v1694_v51  ;;  %v1722_v24 = vld [vmem:[#allocation7 + $0x220] ss:$8 sps:$4 sm:$0xff]   ;;  %v1761_v51 = vld [vmem:[#allocation7 + $0x2f0] ss:$8 sps:$4 sm:$0xff]  }
  0x6e   :  { %378 = vmatprep.subr.bf16.mxu1 %v1653_v25  ;;  %v1724_v25 = vld [vmem:[#allocation7 + $0x224] ss:$8 sps:$4 sm:$0xff]  }
  0x70   :  { %623 = vmatpush1.bf16.msra.mxu0 %v1692_v52  ;;  %v188_v52 = vld [vmem:[#allocation8 + $0x1] ss:$8 sm:$0x3] }
  0x71   :  { %379 = vmatpush1.bf16.msra.mxu1 %v1655_v26  ;;  %624 = vmatprep.subr.bf16.mxu0 %v1697_v53  ;;  %v1727_v26 = vld [vmem:[#allocation7 + $0x234] ss:$8 sps:$4 sm:$0xff]   ;;  %v193_v53 = vrot.slane %v188_v52, %v2042_v5 }
  0x72   :  { %380 = vmatprep.subr.bf16.mxu1 %v1656_v27  ;;  %v1725_v27 = vld [vmem:[#allocation7 + $0x230] ss:$8 sps:$4 sm:$0xff]  }
  0x74   :  { %625 = vmatpush1.bf16.msra.mxu0 %v1695_v54  ;;  %v197_v54 = vrot.slane %v188_v52, %v2044_v7  ;;  %v1815_v52 = vld [vmem:[#allocation7 + $0x410] ss:$8 sps:$4 sm:$0xff]  }
  0x75   :  { %381 = vmatpush1.bf16.msra.mxu1 %v1658_v28  ;;  %626 = vmatprep.subr.bf16.mxu0 %v1700_v55  ;;  %v1730_v28 = vld [vmem:[#allocation7 + $0x244] ss:$8 sps:$4 sm:$0xff]  }
  0x76   :  { %382 = vmatprep.subr.bf16.mxu1 %v1659_v29  ;;  %v1728_v29 = vld [vmem:[#allocation7 + $0x240] ss:$8 sps:$4 sm:$0xff]  }
  0x78   :  { %627 = vmatpush1.bf16.msra.mxu0 %v1698_v56 }
  0x79   :  { %383 = vmatpush1.bf16.msra.mxu1 %v1661_v30  ;;  %628 = vmatprep.subr.bf16.mxu0 %v1703_v57  ;;  %v1733_v30 = vld [vmem:[#allocation7 + $0x254] ss:$8 sps:$4 sm:$0xff]  }
  0x7a   :  { %384 = vmatprep.subr.bf16.mxu1 %v1662_v31  ;;  %v1731_v31 = vld [vmem:[#allocation7 + $0x250] ss:$8 sps:$4 sm:$0xff]  }
  0x7c   :  { %629 = vmatpush1.bf16.msra.mxu0 %v1701_v58 }
  0x7d   :  { %385 = vmatpush1.bf16.msra.mxu1 %v1664_v32  ;;  %630 = vmatprep.subr.bf16.mxu0 %v1706_v59  ;;  %v1736_v32 = vld [vmem:[#allocation7 + $0x264] ss:$8 sps:$4 sm:$0xff]  }
  0x7e   :  { %386 = vmatprep.subr.bf16.mxu1 %v1665_v33  ;;  %v1734_v33 = vld [vmem:[#allocation7 + $0x260] ss:$8 sps:$4 sm:$0xff]  }
  0x80   :  { %631 = vmatpush1.bf16.msra.mxu0 %v1704_v60 }
  0x81   :  { %387 = vmatpush1.bf16.msra.mxu1 %v1667_v34  ;;  %632 = vmatprep.subr.bf16.mxu0 %v1709_v61  ;;  %v1739_v34 = vld [vmem:[#allocation7 + $0x274] ss:$8 sps:$4 sm:$0xff]  }
  0x82   :  { %388 = vmatprep.subr.bf16.mxu1 %v1668_v35  ;;  %v1737_v35 = vld [vmem:[#allocation7 + $0x270] ss:$8 sps:$4 sm:$0xff]  }
  0x84   :  { %633 = vmatpush1.bf16.msra.mxu0 %v1707_v62 }
  0x85   :  { %389 = vmatpush1.bf16.msra.mxu1 %v1670_v36  ;;  %634 = vmatprep.subr.bf16.mxu0 %v1712_v63  ;;  %v1742_v36 = vld [vmem:[#allocation7 + $0x284] ss:$8 sps:$4 sm:$0xff]  }
  0x86   :  { %390 = vmatprep.subr.bf16.mxu1 %v1671_v37  ;;  %v1740_v37 = vld [vmem:[#allocation7 + $0x280] ss:$8 sps:$4 sm:$0xff]  }
  0x88   :  { %635 = vmatpush1.bf16.msra.mxu0 %v1710_v0 }
  0x89   :  { %391 = vmatpush1.bf16.msra.mxu1 %v1673_v38  ;;  %636 = vmatprep.subr.bf16.mxu0 %v1715_v1  ;;  %v1745_v38 = vld [vmem:[#allocation7 + $0x294] ss:$8 sps:$4 sm:$0xff]   ;;  %v1766_v1 = vld [vmem:[#allocation7 + $0x304] ss:$8 sps:$4 sm:$0xff]  }
  0x8a   :  { %860 = vmatprep.subr.bf16.mxu1 %v1724_v25  ;;  %v1794_v25 = vld [vmem:[#allocation7 + $0x3a0] ss:$8 sps:$4 sm:$0xff]  }
  0x8c   :  { %637 = vmatpush1.bf16.msra.mxu0 %v1713_v2  ;;  %v1764_v2 = vld [vmem:[#allocation7 + $0x300] ss:$8 sps:$4 sm:$0xff]  }
  0x8d   :  { %638 = vmatprep.subr.bf16.mxu0 %v1718_v20  ;;  %v1790_v20 = vld [vmem:[#allocation7 + $0x384] ss:$8 sps:$4 sm:$0xff]  }
  0x90   :  { %639 = vmatpush1.bf16.msra.mxu0 %v1716_v21  ;;  %v1788_v21 = vld [vmem:[#allocation7 + $0x380] ss:$8 sps:$4 sm:$0xff]  }
  0x91   :  { %640 = vmatprep.subr.bf16.mxu0 %v1721_v22  ;;  %v1793_v22 = vld [vmem:[#allocation7 + $0x394] ss:$8 sps:$4 sm:$0xff]  }
  0x94   :  { %641 = vmatpush1.bf16.msra.mxu0 %v1719_v23  ;;  %v1791_v23 = vld [vmem:[#allocation7 + $0x390] ss:$8 sps:$4 sm:$0xff]  }
 0x125   :  { %v144_v10 = vpop.f32.mrb[0].mxu0 }
 0x126   :  { %v145_v11 = vadd.f32 %v144_v10, %v79_v8  ;;  %v146_v12 = vpop.f32.mrb[1].mxu0  ;;  %v1770_v8 = vld [vmem:[#allocation7 + $0x320] ss:$8 sps:$4 sm:$0xff]   ;;  %v1775_v10 = vld [vmem:[#allocation7 + $0x334] ss:$8 sps:$4 sm:$0xff]  }
 0x127   :  { %v147_v13 = vadd.f32 %v146_v12, %v83_v9  ;;  %v148_v14 = vpop.f32.mrb[2].mxu0  ;;  %v1772_v9 = vld [vmem:[#allocation7 + $0x324] ss:$8 sps:$4 sm:$0xff]  }
 0x128   :  { %v151_v15 = vmax.f32 %v145_v11, 0.0  ;;  %v149_v16 = vpop.f32.mrb[3].mxu0  ;;  %1110 = vmatprep.subr.bf16.mxu0 %v1772_v9  ;;  %v1773_v11 = vld [vmem:[#allocation7 + $0x330] ss:$8 sps:$4 sm:$0xff]   ;;  %v1778_v12 = vld [vmem:[#allocation7 + $0x344] ss:$8 sps:$4 sm:$0xff]  }
 0x129   :  { %v152_v17 = vmax.f32 %v147_v13, 0.0  ;;  %v1776_v13 = vld [vmem:[#allocation7 + $0x340] ss:$8 sps:$4 sm:$0xff]   ;;  %v1781_v14 = vld [vmem:[#allocation7 + $0x354] ss:$8 sps:$4 sm:$0xff]  }
 0x12a   :  { %v185_v19 = vpack.c.bf16 %v151_v15, %v151_v15  ;;  %v1779_v15 = vld [vmem:[#allocation7 + $0x350] ss:$8 sps:$4 sm:$0xff]   ;;  %v1784_v16 = vld [vmem:[#allocation7 + $0x364] ss:$8 sps:$4 sm:$0xff]  }
 0x12b   :  { %v186_v18 = vpack.c.bf16 %v152_v17, %v152_v17  ;;  %v1782_v17 = vld [vmem:[#allocation7 + $0x360] ss:$8 sps:$4 sm:$0xff]  }
 0x12d   :  { %392 = vmatprep.mubr.bf16.mxu1 %v186_v18  ;;  %v1787_v18 = vld [vmem:[#allocation7 + $0x374] ss:$8 sps:$4 sm:$0xff]  }
 0x12e   :  { %393 = vmatmul.mubr.bf16.vlgmr.msra.gmra.mrb[0].mxu1 %v185_v19  ;;  %v1785_v19 = vld [vmem:[#allocation7 + $0x370] ss:$8 sps:$4 sm:$0xff]  }
 0x12f   :  { %861 = vmatpush1.bf16.msra.mxu1 %v1722_v24  ;;  %v1796_v24 = vld [vmem:[#allocation7 + $0x3a4] ss:$8 sps:$4 sm:$0xff]  }
 0x130   :  { %862 = vmatprep.subr.bf16.mxu1 %v1727_v26  ;;  %v1799_v26 = vld [vmem:[#allocation7 + $0x3b4] ss:$8 sps:$4 sm:$0xff]  }
 0x133   :  { %863 = vmatpush1.bf16.msra.mxu1 %v1725_v27  ;;  %v1797_v27 = vld [vmem:[#allocation7 + $0x3b0] ss:$8 sps:$4 sm:$0xff]  }
 0x134   :  { %864 = vmatprep.subr.bf16.mxu1 %v1730_v28  ;;  %v1802_v28 = vld [vmem:[#allocation7 + $0x3c4] ss:$8 sps:$4 sm:$0xff]  }
 0x137   :  { %865 = vmatpush1.bf16.msra.mxu1 %v1728_v29  ;;  %v1800_v29 = vld [vmem:[#allocation7 + $0x3c0] ss:$8 sps:$4 sm:$0xff]  }
 0x138   :  { %866 = vmatprep.subr.bf16.mxu1 %v1733_v30  ;;  %v1805_v30 = vld [vmem:[#allocation7 + $0x3d4] ss:$8 sps:$4 sm:$0xff]  }
 0x13b   :  { %867 = vmatpush1.bf16.msra.mxu1 %v1731_v31  ;;  %v1803_v31 = vld [vmem:[#allocation7 + $0x3d0] ss:$8 sps:$4 sm:$0xff]  }
 0x13c   :  { %868 = vmatprep.subr.bf16.mxu1 %v1736_v32  ;;  %v1808_v32 = vld [vmem:[#allocation7 + $0x3e4] ss:$8 sps:$4 sm:$0xff]  }
 0x13f   :  { %869 = vmatpush1.bf16.msra.mxu1 %v1734_v33  ;;  %v1806_v33 = vld [vmem:[#allocation7 + $0x3e0] ss:$8 sps:$4 sm:$0xff]  }
 0x140   :  { %870 = vmatprep.subr.bf16.mxu1 %v1739_v34  ;;  %v1811_v34 = vld [vmem:[#allocation7 + $0x3f4] ss:$8 sps:$4 sm:$0xff]  }
 0x143   :  { %871 = vmatpush1.bf16.msra.mxu1 %v1737_v35  ;;  %v1809_v35 = vld [vmem:[#allocation7 + $0x3f0] ss:$8 sps:$4 sm:$0xff]  }
 0x144   :  { %872 = vmatprep.subr.bf16.mxu1 %v1742_v36  ;;  %v438_v36 = vld [vmem:[#allocation8 + $0x2] ss:$8 sm:$0x3] }
 0x147   :  { %873 = vmatpush1.bf16.msra.mxu1 %v1740_v37  ;;  %v443_v37 = vrot.slane %v438_v36, %v2042_v5 }
 0x148   :  { %874 = vmatprep.subr.bf16.mxu1 %v1745_v38  ;;  %v447_v38 = vrot.slane %v438_v36, %v2044_v7  ;;  %v1187_v36 = vld [vmem:[#allocation8 + $0x5] ss:$0 sm:$0xff] }
 0x14b   :  { %875 = vmatpush1.bf16.msra.mxu1 %v1743_v39 }
 0x14c   :  { %876 = vmatprep.subr.bf16.mxu1 %v1748_v40 }
 0x14f   :  { %877 = vmatpush1.bf16.msra.mxu1 %v1746_v41 }
 0x150   :  { %878 = vmatprep.subr.bf16.mxu1 %v1751_v42 }
 0x153   :  { %879 = vmatpush1.bf16.msra.mxu1 %v1749_v43 }
 0x154   :  { %880 = vmatprep.subr.bf16.mxu1 %v1754_v44 }
 0x157   :  { %881 = vmatpush1.bf16.msra.mxu1 %v1752_v45 }
 0x158   :  { %882 = vmatprep.subr.bf16.mxu1 %v1757_v46 }
 0x15b   :  { %883 = vmatpush1.bf16.msra.mxu1 %v1755_v47 }
 0x15c   :  { %884 = vmatprep.subr.bf16.mxu1 %v1760_v48 }
 0x15f   :  { %885 = vmatpush1.bf16.msra.mxu1 %v1758_v49  ;;  %v1814_v49 = vld [vmem:[#allocation7 + $0x404] ss:$8 sps:$4 sm:$0xff]  }
 0x160   :  { %886 = vmatprep.subr.bf16.mxu1 %v1763_v50  ;;  %v1812_v50 = vld [vmem:[#allocation7 + $0x400] ss:$8 sps:$4 sm:$0xff]  }
 0x163   :  { %887 = vmatpush1.bf16.msra.mxu1 %v1761_v51  ;;  %v1817_v51 = vld [vmem:[#allocation7 + $0x414] ss:$8 sps:$4 sm:$0xff]  }
 0x164   :  { %888 = vmatprep.subr.bf16.mxu1 %v1766_v1  ;;  %v688_v1 = vld [vmem:[#allocation8 + $0x3] ss:$8 sm:$0x3] }
 0x167   :  { %889 = vmatpush1.bf16.msra.mxu1 %v1764_v2  ;;  %v693_v2 = vrot.slane %v688_v1, %v2042_v5 }
 0x168   :  { %890 = vmatprep.subr.bf16.mxu1 %v1769_v4  ;;  %v697_v4 = vrot.slane %v688_v1, %v2044_v7 }
 0x16b   :  { %891 = vmatpush1.bf16.msra.mxu1 %v1767_v6 }
 0x201   :  { %v394_v55 = vpop.f32.mrb[0].mxu1 }
 0x202   :  { %v395_v56 = vadd.f32 %v394_v55, %v193_v53  ;;  %v396_v57 = vpop.f32.mrb[1].mxu1  ;;  %v1818_v53 = vld [vmem:[#allocation7 + $0x4a0] ss:$8 sps:$4 sm:$0xff]   ;;  %v1820_v55 = vld [vmem:[#allocation7 + $0x4b0] ss:$8 sps:$4 sm:$0xff]  }
 0x203   :  { %v397_v58 = vadd.f32 %v396_v57, %v197_v54  ;;  %v398_v59 = vpop.f32.mrb[2].mxu1  ;;  %v1819_v54 = vld [vmem:[#allocation7 + $0x420] ss:$8 sps:$4 sm:$0xff]   ;;  %1590 = vmatprep.subr.bf16.mxu1 %v1818_v53 }
 0x204   :  { %v401_v60 = vmax.f32 %v395_v56, 0.0  ;;  %v399_v61 = vpop.f32.mrb[3].mxu1  ;;  %v1821_v56 = vld [vmem:[#allocation7 + $0x430] ss:$8 sps:$4 sm:$0xff]   ;;  %v1822_v57 = vld [vmem:[#allocation7 + $0x4c0] ss:$8 sps:$4 sm:$0xff]  }
 0x205   :  { %v402_v62 = vmax.f32 %v397_v58, 0.0  ;;  %v1823_v58 = vld [vmem:[#allocation7 + $0x440] ss:$8 sps:$4 sm:$0xff]   ;;  %v1824_v59 = vld [vmem:[#allocation7 + $0x4d0] ss:$8 sps:$4 sm:$0xff]  }
 0x206   :  { %v435_v0 = vpack.c.bf16 %v401_v60, %v401_v60  ;;  %v1825_v60 = vld [vmem:[#allocation7 + $0x450] ss:$8 sps:$4 sm:$0xff]   ;;  %v1826_v61 = vld [vmem:[#allocation7 + $0x4e0] ss:$8 sps:$4 sm:$0xff]  }
 0x207   :  { %v436_v63 = vpack.c.bf16 %v402_v62, %v402_v62  ;;  %v1827_v62 = vld [vmem:[#allocation7 + $0x460] ss:$8 sps:$4 sm:$0xff]  }
 0x209   :  { %642 = vmatprep.mubr.bf16.mxu0 %v436_v63  ;;  %v1828_v63 = vld [vmem:[#allocation7 + $0x4f0] ss:$8 sps:$4 sm:$0xff]  }
 0x20a   :  { %643 = vmatmul.mubr.bf16.vlgmr.msra.gmra.mrb[4].mxu0 %v435_v0  ;;  %v1829_v0 = vld [vmem:[#allocation7 + $0x470] ss:$8 sps:$4 sm:$0xff]  }
 0x20b   :  { %1111 = vmatpush1.bf16.msra.mxu0 %v1770_v8 }
 0x20c   :  { %1112 = vmatprep.subr.bf16.mxu0 %v1775_v10 }
 0x20f   :  { %1113 = vmatpush1.bf16.msra.mxu0 %v1773_v11 }
 0x210   :  { %1114 = vmatprep.subr.bf16.mxu0 %v1778_v12 }
 0x213   :  { %1115 = vmatpush1.bf16.msra.mxu0 %v1776_v13 }
 0x214   :  { %1116 = vmatprep.subr.bf16.mxu0 %v1781_v14 }
 0x217   :  { %1117 = vmatpush1.bf16.msra.mxu0 %v1779_v15 }
 0x218   :  { %1118 = vmatprep.subr.bf16.mxu0 %v1784_v16 }
 0x21b   :  { %1119 = vmatpush1.bf16.msra.mxu0 %v1782_v17  ;;  %v1830_v17 = vld [vmem:[#allocation7 + $0x500] ss:$8 sps:$4 sm:$0xff]  }
 0x21c   :  { %1120 = vmatprep.subr.bf16.mxu0 %v1787_v18  ;;  %v1831_v18 = vld [vmem:[#allocation7 + $0x480] ss:$8 sps:$4 sm:$0xff]  }
 0x21f   :  { %1121 = vmatpush1.bf16.msra.mxu0 %v1785_v19  ;;  %v1832_v19 = vld [vmem:[#allocation7 + $0x510] ss:$8 sps:$4 sm:$0xff]  }
 0x220   :  { %1122 = vmatprep.subr.bf16.mxu0 %v1790_v20  ;;  %v1833_v20 = vld [vmem:[#allocation7 + $0x490] ss:$8 sps:$4 sm:$0xff]  }
 0x223   :  { %1123 = vmatpush1.bf16.msra.mxu0 %v1788_v21  ;;  %v938_v21 = vld [vmem:[#allocation8 + $0x4] ss:$8 sm:$0x3] }
 0x224   :  { %1124 = vmatprep.subr.bf16.mxu0 %v1793_v22  ;;  %v943_v22 = vrot.slane %v938_v21, %v2042_v5 }
 0x227   :  { %1125 = vmatpush1.bf16.msra.mxu0 %v1791_v23  ;;  %v947_v23 = vrot.slane %v938_v21, %v2044_v7 }
 0x228   :  { %1126 = vmatprep.subr.bf16.mxu0 %v1796_v24 }
 0x22b   :  { %1127 = vmatpush1.bf16.msra.mxu0 %v1794_v25 }
 0x22c   :  { %1128 = vmatprep.subr.bf16.mxu0 %v1799_v26 }
 0x22f   :  { %1129 = vmatpush1.bf16.msra.mxu0 %v1797_v27 }
 0x230   :  { %1130 = vmatprep.subr.bf16.mxu0 %v1802_v28 }
 0x233   :  { %1131 = vmatpush1.bf16.msra.mxu0 %v1800_v29 }
 0x234   :  { %1132 = vmatprep.subr.bf16.mxu0 %v1805_v30 }
 0x237   :  { %1133 = vmatpush1.bf16.msra.mxu0 %v1803_v31 }
 0x238   :  { %1134 = vmatprep.subr.bf16.mxu0 %v1808_v32 }
 0x23b   :  { %1135 = vmatpush1.bf16.msra.mxu0 %v1806_v33 }
 0x23c   :  { %1136 = vmatprep.subr.bf16.mxu0 %v1811_v34  ;;  %v2057_v34 = vand.u32 127, %v76_v3 }
 0x23e   :  { %vm1326_vm1 = vcmp.lt.s32.totalorder %v2057_v34, 6  ;;  %vm1327_vm2 = vcmp.ge.s32.totalorder %v2057_v34, 6  ;;  %vm1328_vm3 = vcmp.lt.s32.totalorder %v2057_v34, 14  ;;  %vm1412_vm11 = vcmp.eq.s32.totalorder %v2057_v34, 16 }
 0x23f   :  { %1137 = vmatpush1.bf16.msra.mxu0 %v1809_v35  ;;  %vm2066_vm4 = vmand %vm1327_vm2, %vm1328_vm3  ;;  %vm1414_vm12 = vcmp.eq.s32.totalorder %v2057_v34, 17  ;;  %vm1416_vm13 = vcmp.eq.s32.totalorder %v2057_v34, 18  ;;  %vm1419_vm14 = vcmp.eq.s32.totalorder %v2057_v34, 19 }
 0x240   :  { %1138 = vmatprep.subr.bf16.mxu0 %v1814_v49 }
 0x243   :  { %1139 = vmatpush1.bf16.msra.mxu0 %v1812_v50 }
 0x244   :  { %1140 = vmatprep.subr.bf16.mxu0 %v1817_v51 }
 0x247   :  { %1141 = vmatpush1.bf16.msra.mxu0 %v1815_v52 }
 0x2dd   :  { %v644_v39 = vpop.f32.mrb[4].mxu0 }
 0x2de   :  { %v645_v40 = vadd.f32 %v644_v39, %v443_v37  ;;  %v646_v41 = vpop.f32.mrb[5].mxu0  ;;  %v1362_v39 = vld [vmem:[#allocation5] sm:$0xff] }
 0x2df   :  { %v647_v42 = vadd.f32 %v646_v41, %v447_v38  ;;  %v648_v43 = vpop.f32.mrb[6].mxu0 }
 0x2e0   :  { %v651_v44 = vmax.f32 %v645_v40, 0.0  ;;  %v649_v45 = vpop.f32.mrb[7].mxu0 }
 0x2e1   :  { %v652_v46 = vmax.f32 %v647_v42, 0.0 }
 0x2e2   :  { %v685_v48 = vpack.c.bf16 %v651_v44, %v651_v44 }
 0x2e3   :  { %v686_v47 = vpack.c.bf16 %v652_v46, %v652_v46 }
 0x2e5   :  { %892 = vmatprep.mubr.bf16.mxu1 %v686_v47 }
 0x2e6   :  { %893 = vmatmul.mubr.bf16.vlgmr.msra.gmra.mrb[4].mxu1 %v685_v48 }
 0x2e7   :  { %1591 = vmatpush3.bf16.msra.mxu1 %v1819_v54 }
 0x2e8   :  { %1592 = vmatprep.subr.bf16.mxu1 %v1820_v55 }
 0x2eb   :  { %1593 = vmatpush3.bf16.msra.mxu1 %v1821_v56 }
 0x2ec   :  { %1594 = vmatprep.subr.bf16.mxu1 %v1822_v57 }
 0x2ef   :  { %1595 = vmatpush3.bf16.msra.mxu1 %v1823_v58 }
 0x2f0   :  { %1596 = vmatprep.subr.bf16.mxu1 %v1824_v59 }
 0x2f3   :  { %1597 = vmatpush3.bf16.msra.mxu1 %v1825_v60 }
 0x2f4   :  { %1598 = vmatprep.subr.bf16.mxu1 %v1826_v61 }
 0x2f7   :  { %1599 = vmatpush3.bf16.msra.mxu1 %v1827_v62 }
 0x2f8   :  { %1600 = vmatprep.subr.bf16.mxu1 %v1828_v63 }
 0x2fb   :  { %1601 = vmatpush3.bf16.msra.mxu1 %v1829_v0 }
 0x2fc   :  { %1602 = vmatprep.subr.bf16.mxu1 %v1830_v17 }
 0x2ff   :  { %1603 = vmatpush3.bf16.msra.mxu1 %v1831_v18 }
 0x300   :  { %1604 = vmatprep.subr.bf16.mxu1 %v1832_v19 }
 0x303   :  { %1605 = vmatpush3.bf16.msra.mxu1 %v1833_v20 }
 0x3b9   :  { %v894_v6 = vpop.f32.mrb[4].mxu1 }
 0x3ba   :  { %v895_v8 = vadd.f32 %v894_v6, %v693_v2  ;;  %v896_v9 = vpop.f32.mrb[5].mxu1 }
 0x3bb   :  { %v897_v10 = vadd.f32 %v896_v9, %v697_v4  ;;  %v898_v11 = vpop.f32.mrb[6].mxu1 }
 0x3bc   :  { %v901_v12 = vmax.f32 %v895_v8, 0.0  ;;  %v899_v13 = vpop.f32.mrb[7].mxu1 }
 0x3bd   :  { %v902_v14 = vmax.f32 %v897_v10, 0.0 }
 0x3be   :  { %v935_v16 = vpack.c.bf16 %v901_v12, %v901_v12 }
 0x3bf   :  { %v936_v15 = vpack.c.bf16 %v902_v14, %v902_v14 }
 0x3c1   :  { %1142 = vmatprep.mubr.bf16.mxu0 %v936_v15 }
 0x3c2   :  { %1143 = vmatmul.mubr.bf16.vlgmr.msra.gmra.mrb[8].mxu0 %v935_v16 }
 0x495   :  { %v1144_v24 = vpop.f32.mrb[8].mxu0 }
 0x496   :  { %v1145_v25 = vadd.f32 %v1144_v24, %v943_v22  ;;  %v1146_v26 = vpop.f32.mrb[9].mxu0 }
 0x497   :  { %v1147_v27 = vadd.f32 %v1146_v26, %v947_v23  ;;  %v1148_v28 = vpop.f32.mrb[10].mxu0 }
 0x498   :  { %v1151_v29 = vmax.f32 %v1145_v25, 0.0  ;;  %v1149_v30 = vpop.f32.mrb[11].mxu0 }
 0x499   :  { %v1152_v31 = vmax.f32 %v1147_v27, 0.0 }
 0x49a   :  { %v1185_v33 = vpack.c.bf16 %v1151_v29, %v1151_v29 }
 0x49b   :  { %v1186_v32 = vpack.c.bf16 %v1152_v31, %v1152_v31 }
 0x49d   :  { %1316 = vmatprep.mubr.bf16.mxu1 %v1186_v32 }
 0x49e   :  { %1317 = vmatmul.mubr.bf16.vlgmr.msra.gmra.mrb[8].mxu1 %v1185_v33 }
 0x571   :  { %v1606_v35 = vpop.f32.mrb[8].mxu1 }
 0x572   :  { %v1607_v5 = vpop.f32.mrb[9].mxu1 }
 0x573   :  { %v1608_v37 = vadd.f32 %v1607_v5, %v1606_v35  ;;  %v1609_v7 = vpop.f32.mrb[10].mxu1 }
 0x574   :  { %v1610_v38 = vpop.f32.mrb[11].mxu1 }
 0x575   :  { %v1319_v40 = vadd.f32 %v1608_v37, %v1187_v36 }
 0x577   :  { %v1330_v41 = vsel %vm1326_vm1, %v1319_v40, -1e+30  ;;  %v1363_v42 = vadd.f32 %v1362_v39, %v1319_v40  ;;  %v1333_v44 = vsel %vm2066_vm4, %v1319_v40, -1e+30 }
 0x578   :  { %1331 = vmax.xlane.f32.xlu1 %v1330_v41 }
 0x579   :  { %v1364_v43 = vsel %vm1326_vm1, %v1363_v42, -1e+30  ;;  %v1365_v45 = vsel %vm2066_vm4, %v1363_v42, -1e+30 }
 0x57a   :  { %1366 = vmax.xlane.f32.xlu0 %v1364_v43 }
 0x57c   :  { %1334 = vmax.xlane.f32.xlu1 %v1333_v44 }
 0x57e   :  { %1384 = vmax.xlane.f32.xlu0 %v1365_v45 }
 0x605   :  { %v1332_v46 = vpop.xlane.xlu1 %1331 }
 0x607   :  { %v1367_v47 = vpop.xlane.xlu0 %1366 }
 0x608   :  { %vm1368_vm5 = vcmp.eq.f32.partialorder %v1364_v43, %v1367_v47 }
 0x609   :  { %v1369_v48 = vsel %vm1368_vm5, %v2057_v34, 1073741824  ;;  %v1335_v49 = vpop.xlane.xlu1 %1334 }
 0x60a   :  { %v1336_v50 = vsel %vm1326_vm1, %v1332_v46, %v1335_v49  ;;  %v1371_v51 = vshra.s32 %v1369_v48, 16  ;;  %v1370_v63 = vand.u32 65535, %v1369_v48 }
 0x60b   :  { %v1337_v52 = vsub.f32 %v1319_v40, %v1336_v50  ;;  %v1385_v53 = vpop.xlane.xlu0 %1384 }
 0x60c   :  { %vm1386_vm6 = vcmp.eq.f32.partialorder %v1365_v45, %v1385_v53  ;;  %v1373_v54 = vcvt.s32.f32 %v1371_v51  ;;  %v1372_v2 = vcvt.s32.f32 %v1370_v63 }
 0x60d   :  { %v1338_v55 = vmul.f32 1.442695, %v1337_v52  ;;  %v1387_v56 = vsel %vm1386_vm6, %v2057_v34, 1073741824 }
 0x60e   :  { %1374 = vmin.xlane.f32.xlu0 %v1373_v54  ;;  %v1389_v57 = vshra.s32 %v1387_v56, 16  ;;  %v1388_v0 = vand.u32 65535, %v1387_v56 }
 0x60f   :  { %1834 = vpow2.f32 %v1338_v55 }
 0x610   :  { %v1391_v58 = vcvt.s32.f32 %v1389_v57  ;;  %v1390_v8 = vcvt.s32.f32 %v1388_v0 }
 0x612   :  { %1392 = vmin.xlane.f32.xlu1 %v1391_v58 }
 0x619   :  { %v1835_v59 = vpop.eup %1834 }
 0x61a   :  { %v1340_v60 = vsel %vm1328_vm3, %v1835_v59, 0.0 }
 0x61b   :  { %v1344_v61 = vsel %vm2066_vm4, %v1340_v60, 0.0  ;;  %v1341_v62 = vsel %vm1326_vm1, %v1340_v60, 0.0 }
 0x61c   :  { %1345 = vadd.xlane.f32.xlu1 %v1344_v61  ;;  %1342 = vadd.xlane.f32.xlu0 %v1341_v62 }
 0x69b   :  { %v1375_v1 = vpop.xlane.xlu0 %1374 }
 0x69c   :  { %vm1376_vm7 = vcmp.eq.f32.partialorder %v1373_v54, %v1375_v1  ;;  %v1381_v24 = vcvt.f32.s32 %v1375_v1 }
 0x69d   :  { %v1377_v4 = vsel %vm1376_vm7, %v1372_v2, inf }
 0x69e   :  { %1378 = vmin.xlane.f32.xlu0 %v1377_v4  ;;  %v1382_v26 = vshll.u32 %v1381_v24, 16 }
 0x69f   :  { %v1393_v6 = vpop.xlane.xlu1 %1392 }
 0x6a0   :  { %vm1394_vm8 = vcmp.eq.f32.partialorder %v1391_v58, %v1393_v6  ;;  %v1399_v27 = vcvt.f32.s32 %v1393_v6 }
 0x6a1   :  { %v1395_v9 = vsel %vm1394_vm8, %v1390_v8, inf }
 0x6a2   :  { %1396 = vmin.xlane.f32.xlu1 %v1395_v9  ;;  %v1400_v31 = vshll.u32 %v1399_v27, 16 }
 0x6a9   :  { %v1343_v10 = vpop.xlane.xlu0 %1342  ;;  %v1346_v11 = vpop.xlane.xlu1 %1345 }
 0x6aa   :  { %1836 = vlog2.f32 %v1343_v10  ;;  %v1347_v12 = vsel %vm1326_vm1, %v1343_v10, %v1346_v11 }
 0x6ab   :  { %1838 = vrcp.f32 %v1347_v12 }
 0x6ac   :  { %1840 = vlog2.f32 %v1346_v11 }
 0x6b4   :  { %v1837_v13 = vpop.eup %1836 }
 0x6b5   :  { %v1839_v14 = vpop.eup %1838  ;;  %v1352_v15 = vmul.f32 0.6931472, %v1837_v13 }
 0x6b6   :  { %v1841_v16 = vpop.eup %1840  ;;  %v1349_v17 = vmul.f32 %v1839_v14, %v1340_v60 }
 0x6b7   :  { %v1354_v18 = vmul.f32 0.6931472, %v1841_v16 }
 0x6b8   :  { %v1350_v19 = vsel %vm1328_vm3, %v1349_v17, 0.0 }
 0x6b9   :  { %v1355_v20 = vsel %vm1326_vm1, %v1352_v15, %v1354_v18 }
 0x6ba   :  { %v1356_v21 = vsub.f32 %v1337_v52, %v1355_v20 }
 0x6bc   :  { %v1357_v22 = vmul.f32 %v1356_v21, %v1350_v19 }
 0x6be   :  { %v1358_v23 = vsel %vm1328_vm3, %v1357_v22, 0.0 }
 0x6bf   :  { %1359 = vadd.xlane.f32.xlu0 %v1358_v23 }
 0x72b   :  { %v1379_v25 = vpop.xlane.xlu0 %1378 }
 0x72c   :  { %v1380_v28 = vcvt.f32.s32 %v1379_v25 }
 0x72e   :  { %v1383_v29 = vadd.s32 %v1382_v26, %v1380_v28 }
 0x72f   :  { %v1397_v30 = vpop.xlane.xlu1 %1396 }
 0x730   :  { %v1398_v32 = vcvt.f32.s32 %v1397_v30  ;;  %vm1403_vm9 = vcmp.eq.s32.totalorder %v2057_v34, %v1383_v29  ;;  %v1417_v41 = vcvt.s32.f32 %v1383_v29 }
 0x731   :  { %v1404_v33 = vsel %vm1403_vm9, %v1356_v21, 0.0 }
 0x732   :  { %v1401_v35 = vadd.s32 %v1400_v31, %v1398_v32  ;;  %1405 = vadd.xlane.f32.xlu1 %v1404_v33 }
 0x734   :  { %vm1407_vm10 = vcmp.eq.s32.totalorder %v2057_v34, %v1401_v35  ;;  %v1589_v7 = vadd.s32 4294967290, %v1401_v35 }
 0x735   :  { %v1408_v36 = vsel %vm1407_vm10, %v1356_v21, 0.0 }
 0x736   :  { %1409 = vadd.xlane.f32.xlu0 %v1408_v36  ;;  %v1420_v3 = vcvt.s32.f32 %v1589_v7 }
 0x74c   :  { %v1360_v5 = vpop.xlane.xlu0 %1359 }
 0x74d   :  { %v1361_v37 = vsub.f32 0.0, %v1360_v5 }
 0x74f   :  { %v1413_v42 = vsel %vm1412_vm11, %v1361_v37, %v1350_v19 }
 0x7bf   :  { %v1406_v38 = vpop.xlane.xlu1 %1405 }
 0x7c3   :  { %v1410_v39 = vpop.xlane.xlu0 %1409 }
 0x7c4   :  { %v1411_v40 = vadd.f32 %v1410_v39, %v1406_v38 }
 0x7c6   :  { %v1415_v43 = vsel %vm1414_vm12, %v1411_v40, %v1413_v42 }
 0x7c7   :  { %v1418_v44 = vsel %vm1416_vm13, %v1417_v41, %v1415_v43 }
 0x7c8   :  { %v1421_v45 = vsel %vm1419_vm14, %v1420_v3, %v1418_v44 }
 0x7c9   :  { %1422 = vst [vmem:[#allocation10] sm:$0xff] %v1421_v45 }
 0x7ca   :  { %1941 = shalt.err (!%p1938_p8)
}
 0x7cb   :  { %s1942_s13 = scalar_lea.hbm %s2116_s4, 128 }
 0x7cc   :  { %p1943_p9 = scmp.ne.s32.totalorder %s2116_s4, %s1942_s13  ;;  %p1946_p10 = scmp.lt.u32.totalorder %s1942_s13, %s2116_s4 }
 0x7ce   :  { %p1948_p11 = pnand %p1946_p10, %p1943_p9 }
 0x7d0   :  { %1951 = shalt.err (!%p1948_p11)
}
 0x7d1   :  { %1432 = dma.vmem_to_hbm [thread:$0]  %s1430_s10, 128, %s2116_s4, [#allocation4]  }
 0x7d2   :  { %1958 = dma.done.wait [#allocation4], 128  }
 0x7d3   :  { %1959 = vsyncadd [#allocation4], 4294967168 }
 0x7d4   :  { %1436 = vsyncpa [#allocation3], 1 }
 0x7d5   :  { %1437 = vsyncpa [#allocation6], 1 }
 0x7d6   :  { %1438 = vsyncpa [#allocation9], 1 }
 0x7d7   :  { %1439 = vsyncpa [#allocation4], 1 }

</bundles_post_ra>
